<compile_context>
chip_gen: v5e
topology: v5e:2x2
jax: 0.10.0
libtpu: 0.0.40
codegen_flags: <defaults>
</compile_context>

<pallas_src>
import jax
import jax.numpy as jnp
from jax.experimental import pallas as pl
from jax.experimental.pallas import tpu as pltpu


def _attention_kernel(att1_ref, emb_ref, hid_ref, w_dec_ref, b_dec_ref,
                      w_full_ref, b_full_ref, awe_ref, alpha_ref):
    # att1_ref  : (N, A)   precomputed emb @ w_enc + b_enc (batch-invariant)
    # emb_ref   : (N, E)   embedding_attr (shared across batch)
    # hid_ref   : (TB, D)  this tile's decoder hidden states
    # w_dec_ref : (D, A), b_dec_ref : (1, A)
    # w_full_ref: (1, A), b_full_ref: (1, 1)
    # awe_ref   : (TB, E)  attention-weighted encoding tile
    # alpha_ref : (TB, N)  attention weights tile
    att1 = att1_ref[...]                                    # (N, A)

    # decoder_att(decoder_hidden) for the whole tile -> MXU matmul (TB, D) x (D, A)
    att2 = jnp.dot(hid_ref[...], w_dec_ref[...],
                   preferred_element_type=jnp.float32) + b_dec_ref[...]   # (TB, A)

    # relu(att1 + att2.unsqueeze(1))                       -> (TB, N, A)
    z = jnp.maximum(att1[None, :, :] + att2[:, None, :], 0.0)

    # full_att(...).squeeze(2) as a lane reduction over A  -> (TB, N) (lane-dense)
    wf = w_full_ref[...][None, :, :]                        # (1, 1, A)
    att = jnp.sum(z * wf, axis=-1) + b_full_ref[...]        # (TB, N)

    # softmax over the attribute axis (last / lane axis)
    m = jnp.max(att, axis=-1, keepdims=True)
    e = jnp.exp(att - m)
    # exact divide kept (pl.reciprocal(approx=True) would also work, with ~1e-4 rel err)
    alpha = e / jnp.sum(e, axis=-1, keepdims=True)          # (TB, N)

    # (embedding_attr * alpha).sum(dim=1) as a dense MXU matmul: (TB, N) @ (N, E)
    awe = jnp.dot(alpha, emb_ref[...],
                  preferred_element_type=jnp.float32)       # (TB, E)

    awe_ref[...] = awe.astype(awe_ref.dtype)
    alpha_ref[...] = alpha.astype(alpha_ref.dtype)


def _choose_batch_tile(B):
    """Pick a batch tile: one step for tiny B, >=2 sublane-aligned steps otherwise."""
    if B <= 8:
        return B
    if B <= 512:
        return ((pl.cdiv(B, 2) + 7) // 8) * 8   # 2 grid steps (feeds both v7x TCs)
    return 256


def features_and_attr_attention(encoder_features, encoder_attr, decoder_hidden, params):
    """Mirrors FeaturesAndAttrAttention.forward.

    Returns (attention_weighted_encoding (B, E), alpha (B, N)).
    encoder_features / encoder_attr are unused by the forward (as in PyTorch),
    except that batch size is taken from encoder_features.
    """
    del encoder_attr  # unused in the reference forward
    B = encoder_features.shape[0]
    emb = params["embedding_attr"].astype(jnp.float32)
    N, E = emb.shape
    D = decoder_hidden.shape[1]
    A = params["w_enc"].shape[1]

    # Hoisted batch-invariant encoder_att projection (tiny (N,E)x(E,A) matmul).
    att1 = (emb @ params["w_enc"] + params["b_enc"]).astype(jnp.float32)   # (N, A)

    b_dec = params["b_dec"].reshape(1, A).astype(jnp.float32)
    w_full = params["w_full"].reshape(1, A).astype(jnp.float32)
    b_full = params["b_full"].reshape(1, 1).astype(jnp.float32)
    w_dec = params["w_dec"].astype(jnp.float32)

    tb = _choose_batch_tile(B)
    n_blocks = pl.cdiv(B, tb)
    Bp = n_blocks * tb

    hid = decoder_hidden.astype(jnp.float32)
    if Bp != B:
        hid = jnp.pad(hid, ((0, Bp - B), (0, 0)))   # padded rows are sliced off below

    grid_spec = pltpu.PrefetchScalarGridSpec(
        num_scalar_prefetch=0,
        grid=(n_blocks,),
        in_specs=[
            pl.BlockSpec((N, A), lambda b: (0, 0)),    # att1 (batch-invariant)
            pl.BlockSpec((N, E), lambda b: (0, 0)),    # embedding_attr
            pl.BlockSpec((tb, D), lambda b: (b, 0)),   # decoder_hidden tile
            pl.BlockSpec((D, A), lambda b: (0, 0)),    # decoder_att weight
            pl.BlockSpec((1, A), lambda b: (0, 0)),    # decoder_att bias
            pl.BlockSpec((1, A), lambda b: (0, 0)),    # full_att weight (row)
            pl.BlockSpec((1, 1), lambda b: (0, 0)),    # full_att bias
        ],
        out_specs=[
            pl.BlockSpec((tb, E), lambda b: (b, 0)),   # awe tile  (lane-dense)
            pl.BlockSpec((tb, N), lambda b: (b, 0)),   # alpha tile
        ],
    )

    awe, alpha = pl.pallas_call(
        _attention_kernel,
        out_shape=(jax.ShapeDtypeStruct((Bp, E), jnp.float32),
                   jax.ShapeDtypeStruct((Bp, N), jnp.float32)),
        grid_spec=grid_spec,
        compiler_params=pltpu.CompilerParams(dimension_semantics=("parallel",)),
    )(att1, emb, hid, w_dec, b_dec, w_full, b_full)

    if Bp != B:
        awe = awe[:B]
        alpha = alpha[:B]
    return awe, alpha


def _reference(encoder_features, decoder_hidden, params):
    """Pure-JAX reference matching the PyTorch forward semantics."""
    emb = params["embedding_attr"]                               # (N, E)
    att1 = emb @ params["w_enc"] + params["b_enc"]               # (N, A)
    att2 = decoder_hidden @ params["w_dec"] + params["b_dec"]    # (B, A)
    z = jnp.maximum(att1[None, :, :] + att2[:, None, :], 0.0)    # (B, N, A)
    att = jnp.einsum("bna,a->bn", z, params["w_full"]) + params["b_full"]  # (B, N)
    alpha = jax.nn.softmax(att, axis=1)                          # (B, N)
    awe = jnp.einsum("bn,ne->be", alpha, emb)                    # (B, E)
    return awe, alpha


if __name__ == "__main__":
    num_pixels = 16  # unused encoder feature map locations
    E = 32           # encoder_dim (= embedding_attr feature size)
    D = 32           # decoder_dim
    A = 32           # attention_dim
    N = 8            # number of attributes in embedding_attr

    key = jax.random.PRNGKey(0)
    ks = jax.random.split(key, 10)

    params = {
        "embedding_attr": jax.random.normal(ks[0], (N, E), jnp.float32),
        "w_enc": 0.1 * jax.random.normal(ks[1], (E, A), jnp.float32),
        "b_enc": 0.1 * jax.random.normal(ks[2], (A,), jnp.float32),
        "w_dec": 0.1 * jax.random.normal(ks[3], (D, A), jnp.float32),
        "b_dec": 0.1 * jax.random.normal(ks[4], (A,), jnp.float32),
        "w_full": 0.1 * jax.random.normal(ks[5], (A,), jnp.float32),
        "b_full": 0.1 * jax.random.normal(ks[6], (1,), jnp.float32),
    }

    ok = True
    # Two batch sizes: tiny (single grid step, block == full batch) and one that
    # exercises the sublane-aligned 2-step tiling with batch padding.
    for B in (2, 20):
        kf = jax.random.split(jax.random.PRNGKey(B), 3)
        encoder_features = jax.random.normal(kf[0], (B, num_pixels, E), jnp.float32)
        encoder_attr = jax.random.normal(kf[1], (B, N, E), jnp.float32)  # unused
        decoder_hidden = jax.random.normal(kf[2], (B, D), jnp.float32)

        awe, alpha = features_and_attr_attention(
            encoder_features, encoder_attr, decoder_hidden, params)
        jax.block_until_ready((awe, alpha))

        awe_ref, alpha_ref = _reference(encoder_features, decoder_hidden, params)
        ok &= awe.shape == (B, E) and alpha.shape == (B, N)
        ok &= bool(jnp.allclose(awe, awe_ref, atol=1e-5, rtol=1e-5))
        ok &= bool(jnp.allclose(alpha, alpha_ref, atol=1e-5, rtol=1e-5))

    assert ok
    print("KERNEL_OK")
</pallas_src>

<mosaic_0001>
module attributes {stable_mosaic.version = 11 : i64} {
  func.func @_attention_kernel(%arg0: i32, %arg1: memref<8x32xf32, #tpu.memory_space<vmem>>, %arg2: memref<8x32xf32, #tpu.memory_space<vmem>>, %arg3: memref<2x32xf32, #tpu.memory_space<vmem>>, %arg4: memref<32x32xf32, #tpu.memory_space<vmem>>, %arg5: memref<1x32xf32, #tpu.memory_space<vmem>>, %arg6: memref<1x32xf32, #tpu.memory_space<vmem>>, %arg7: memref<1x1xf32, #tpu.memory_space<vmem>>, %arg8: memref<2x32xf32, #tpu.memory_space<vmem>>, %arg9: memref<2x8xf32, #tpu.memory_space<vmem>>) attributes {dimension_semantics = [#tpu.dimension_semantics<parallel>], iteration_bounds = array<i64: 1>, scalar_prefetch = 0 : i64, scratch_operands = 0 : i64, tpu.core_type = #tpu.core_type<tc>, window_params = [{pipeline_mode = #tpu.pipeline_mode<synchronous>, transform_indices = @transform_0, window_bounds = array<i64: 8, 32>}, {pipeline_mode = #tpu.pipeline_mode<synchronous>, transform_indices = @transform_1, window_bounds = array<i64: 8, 32>}, {transform_indices = @transform_2, window_bounds = array<i64: 2, 32>}, {pipeline_mode = #tpu.pipeline_mode<synchronous>, transform_indices = @transform_3, window_bounds = array<i64: 32, 32>}, {pipeline_mode = #tpu.pipeline_mode<synchronous>, transform_indices = @transform_4, window_bounds = array<i64: 1, 32>}, {pipeline_mode = #tpu.pipeline_mode<synchronous>, transform_indices = @transform_5, window_bounds = array<i64: 1, 32>}, {pipeline_mode = #tpu.pipeline_mode<synchronous>, transform_indices = @transform_6, window_bounds = array<i64: 1, 1>}, {transform_indices = @transform_7, window_bounds = array<i64: 2, 32>}, {transform_indices = @transform_8, window_bounds = array<i64: 2, 8>}]} {
    %c0 = arith.constant 0 : index
    %c0_0 = arith.constant 0 : index
    %0 = vector.load %arg1[%c0, %c0_0] : memref<8x32xf32, #tpu.memory_space<vmem>>, vector<8x32xf32>
    %c0_1 = arith.constant 0 : index
    %c0_2 = arith.constant 0 : index
    %1 = vector.load %arg3[%c0_1, %c0_2] : memref<2x32xf32, #tpu.memory_space<vmem>>, vector<2x32xf32>
    %c0_3 = arith.constant 0 : index
    %c0_4 = arith.constant 0 : index
    %2 = vector.load %arg4[%c0_3, %c0_4] : memref<32x32xf32, #tpu.memory_space<vmem>>, vector<32x32xf32>
    %cst = arith.constant dense<0.000000e+00> : vector<2x32xf32>
    %3 = tpu.matmul %1, %2, %cst {dimension_numbers = #tpu.dot_dimension_numbers<[1], [0], [0], [1], [0, 0, 1, 1], [], []>} : vector<2x32xf32>, vector<32x32xf32>, vector<2x32xf32> -> vector<2x32xf32>
    %c0_5 = arith.constant 0 : index
    %c0_6 = arith.constant 0 : index
    %4 = vector.load %arg5[%c0_5, %c0_6] : memref<1x32xf32, #tpu.memory_space<vmem>>, vector<1x32xf32>
    %5 = vector.broadcast %4 : vector<1x32xf32> to vector<2x32xf32>
    %6 = arith.addf %3, %5 : vector<2x32xf32>
    %7 = vector.shape_cast %0 : vector<8x32xf32> to vector<1x8x32xf32>
    %8 = vector.shape_cast %6 : vector<2x32xf32> to vector<2x1x32xf32>
    %9 = vector.broadcast %7 : vector<1x8x32xf32> to vector<2x8x32xf32>
    %10 = vector.broadcast %8 : vector<2x1x32xf32> to vector<2x8x32xf32>
    %11 = arith.addf %9, %10 : vector<2x8x32xf32>
    %cst_7 = arith.constant 0.000000e+00 : f32
    %12 = vector.broadcast %cst_7 : f32 to vector<2x8x32xf32>
    %13 = arith.maximumf %11, %12 : vector<2x8x32xf32>
    %c0_8 = arith.constant 0 : index
    %c0_9 = arith.constant 0 : index
    %14 = vector.load %arg6[%c0_8, %c0_9] : memref<1x32xf32, #tpu.memory_space<vmem>>, vector<1x32xf32>
    %15 = vector.shape_cast %14 : vector<1x32xf32> to vector<1x1x32xf32>
    %16 = vector.broadcast %15 : vector<1x1x32xf32> to vector<2x8x32xf32>
    %17 = arith.mulf %13, %16 : vector<2x8x32xf32>
    %cst_10 = arith.constant dense<0.000000e+00> : vector<2x8xf32>
    %18 = vector.multi_reduction <add>, %17, %cst_10 [2] : vector<2x8x32xf32> to vector<2x8xf32>
    %c0_11 = arith.constant 0 : index
    %c0_12 = arith.constant 0 : index
    %19 = vector.load %arg7[%c0_11, %c0_12] : memref<1x1xf32, #tpu.memory_space<vmem>>, vector<1x1xf32>
    %20 = vector.broadcast %19 : vector<1x1xf32> to vector<2x8xf32>
    %21 = arith.addf %18, %20 : vector<2x8xf32>
    %cst_13 = arith.constant dense<0xFF800000> : vector<2xf32>
    %22 = vector.multi_reduction <maximumf>, %21, %cst_13 [1] : vector<2x8xf32> to vector<2xf32>
    %23 = vector.shape_cast %22 : vector<2xf32> to vector<2x1xf32>
    %24 = vector.broadcast %23 : vector<2x1xf32> to vector<2x8xf32>
    %25 = arith.subf %21, %24 : vector<2x8xf32>
    %26 = math.exp %25 : vector<2x8xf32>
    %cst_14 = arith.constant dense<0.000000e+00> : vector<2xf32>
    %27 = vector.multi_reduction <add>, %26, %cst_14 [1] : vector<2x8xf32> to vector<2xf32>
    %28 = vector.shape_cast %27 : vector<2xf32> to vector<2x1xf32>
    %29 = vector.broadcast %28 : vector<2x1xf32> to vector<2x8xf32>
    %30 = arith.divf %26, %29 : vector<2x8xf32>
    %c0_15 = arith.constant 0 : index
    %c0_16 = arith.constant 0 : index
    %31 = vector.load %arg2[%c0_15, %c0_16] : memref<8x32xf32, #tpu.memory_space<vmem>>, vector<8x32xf32>
    %cst_17 = arith.constant dense<0.000000e+00> : vector<2x32xf32>
    %32 = tpu.matmul %30, %31, %cst_17 {dimension_numbers = #tpu.dot_dimension_numbers<[1], [0], [0], [1], [0, 0, 1, 1], [], []>} : vector<2x8xf32>, vector<8x32xf32>, vector<2x32xf32> -> vector<2x32xf32>
    %c0_18 = arith.constant 0 : index
    %c0_19 = arith.constant 0 : index
    %33 = vector.load %arg8[%c0_18, %c0_19] : memref<2x32xf32, #tpu.memory_space<vmem>>, vector<2x32xf32>
    tpu.vector_store %arg8[%c0_18, %c0_19], %32 {strides = array<i32>} : memref<2x32xf32, #tpu.memory_space<vmem>>, vector<2x32xf32>,
    %c0_20 = arith.constant 0 : index
    %c0_21 = arith.constant 0 : index
    %34 = vector.load %arg9[%c0_20, %c0_21] : memref<2x8xf32, #tpu.memory_space<vmem>>, vector<2x8xf32>
    tpu.vector_store %arg9[%c0_20, %c0_21], %30 {strides = array<i32>} : memref<2x8xf32, #tpu.memory_space<vmem>>, vector<2x8xf32>,
    return
  }
  func.func @transform_0(%arg0: i32) -> (i32, i32) {
    %c0_i32 = arith.constant 0 : i32
    %c0_i32_0 = arith.constant 0 : i32
    %c0_i32_1 = arith.constant 0 : i32
    return %c0_i32, %c0_i32_0 : i32, i32
  }
  func.func @transform_1(%arg0: i32) -> (i32, i32) {
    %c0_i32 = arith.constant 0 : i32
    %c0_i32_0 = arith.constant 0 : i32
    %c0_i32_1 = arith.constant 0 : i32
    return %c0_i32, %c0_i32_0 : i32, i32
  }
  func.func @transform_2(%arg0: i32) -> (i32, i32) {
    %c0_i32 = arith.constant 0 : i32
    %c0_i32_0 = arith.constant 0 : i32
    return %arg0, %c0_i32 : i32, i32
  }
  func.func @transform_3(%arg0: i32) -> (i32, i32) {
    %c0_i32 = arith.constant 0 : i32
    %c0_i32_0 = arith.constant 0 : i32
    %c0_i32_1 = arith.constant 0 : i32
    return %c0_i32, %c0_i32_0 : i32, i32
  }
  func.func @transform_4(%arg0: i32) -> (i32, i32) {
    %c0_i32 = arith.constant 0 : i32
    %c0_i32_0 = arith.constant 0 : i32
    %c0_i32_1 = arith.constant 0 : i32
    return %c0_i32, %c0_i32_0 : i32, i32
  }
  func.func @transform_5(%arg0: i32) -> (i32, i32) {
    %c0_i32 = arith.constant 0 : i32
    %c0_i32_0 = arith.constant 0 : i32
    %c0_i32_1 = arith.constant 0 : i32
    return %c0_i32, %c0_i32_0 : i32, i32
  }
  func.func @transform_6(%arg0: i32) -> (i32, i32) {
    %c0_i32 = arith.constant 0 : i32
    %c0_i32_0 = arith.constant 0 : i32
    %c0_i32_1 = arith.constant 0 : i32
    return %c0_i32, %c0_i32_0 : i32, i32
  }
  func.func @transform_7(%arg0: i32) -> (i32, i32) {
    %c0_i32 = arith.constant 0 : i32
    %c0_i32_0 = arith.constant 0 : i32
    return %arg0, %c0_i32 : i32, i32
  }
  func.func @transform_8(%arg0: i32) -> (i32, i32) {
    %c0_i32 = arith.constant 0 : i32
    %c0_i32_0 = arith.constant 0 : i32
    return %arg0, %c0_i32 : i32, i32
  }
}

</mosaic_0001>

<bundles_post_ra>
// kernel: tpu_custom_call.1
= control target key start
LH: loop header
LB: loop body
LE: loop exit
PB: predicated region body
PF: predicated region fallthrough
CT: control target
= control target key end

     0   :  { %s536_s0 = inlined_call_operand.hbm [shape: f32[8,32], index: 0, kind: input, shape index: {}]   ;;  %s537_s1 = inlined_call_operand.hbm [shape: f32[8,32], index: 1, kind: input, shape index: {}]   ;;  %s538_s2 = inlined_call_operand.vmem [shape: f32[2,32], index: 2, kind: input, shape index: {}]   ;;  %s539_s3 = inlined_call_operand.hbm [shape: f32[32,32], index: 3, kind: input, shape index: {}]   ;;  %s540_s4 = inlined_call_operand.vmem [shape: f32[1,32], index: 4, kind: input, shape index: {}]   ;;  %s541_s5 = inlined_call_operand.vmem [shape: f32[1,32], index: 5, kind: input, shape index: {}]   ;;  %s542_s6 = inlined_call_operand.<no memory space> [shape: f32[1,1], index: 6, kind: input, shape index: {}]   ;;  %s543_s7 = inlined_call_operand.hbm [shape: f32[2,32], index: 7, kind: output, shape index: {0}]   ;;  %s544_s8 = inlined_call_operand.hbm [shape: f32[2,8], index: 8, kind: output, shape index: {1}]  }
   0x1   :  { %v14_v0 = vstv %s542_s6 }
   0x2   :  { %15 = vst [vmem:[#allocation2] sm:$0x1] %v14_v0 }
   0x3   :  { %16 = vsyncpa [#allocation4], 0 }
   0x4   :  { %17 = vsyncpa [#allocation7], 0 }
   0x5   :  { %18 = vsyncpa [#allocation5], 0  ;;  %s36_s9 = sshll.u32 %s537_s1, 4  ;;  %s37_s9 = int_to_ptr.hbm [resolvable:$true] %s36_s9 }
   0x6   :  { %19 = vsyncpa [#allocation11], 0  ;;  %s439_s10 = smov [#allocation6]   ;;  %s25_s14 = sshll.u32 %s536_s0, 4  ;;  %s26_s14 = int_to_ptr.hbm [resolvable:$true] %s25_s14 }
   0x7   :  { %s38_s11 = sshll.u32 %s439_s10, 4  ;;  %s440_s6 = smov [#allocation3]   ;;  %s39_s11 = int_to_ptr.vmem [resolvable:$true] %s38_s11 }
   0x8   :  { %41 = dma.hbm_to_vmem [thread:$0]  %s37_s9, 128, %s39_s11, [#allocation7]  }
   0x9   :  { %s27_s15 = sshll.u32 %s440_s6, 4  ;;  %s48_s18 = sshll.u32 %s539_s3, 4  ;;  %s28_s15 = int_to_ptr.vmem [resolvable:$true] %s27_s15  ;;  %s49_s18 = int_to_ptr.hbm [resolvable:$true] %s48_s18 }
   0xa   :  { %30 = dma.hbm_to_vmem [thread:$0]  %s26_s14, 128, %s28_s15, [#allocation4]  }
   0xb   :  { %s441_s1 = smov [#allocation8]   ;;  %s442_s20 = smov 128  }
   0xc   :  { %s50_s19 = sshll.u32 %s441_s1, 4  ;;  %s443_s21 = smov 8   ;;  %s51_s19 = int_to_ptr.vmem [resolvable:$true] %s50_s19 }
   0xd   :  { %56 = dma.hbm_to_vmem [thread:$0]  %s49_s18, 512, %s51_s19, [#allocation7], %s442_s20, %s442_s20, %s443_s21  }
   0xe   :  { %431 = dma.done.wait [#allocation4], 128  }
   0xf   :  { %432 = vsyncadd [#allocation4], 4294967168 }
  0x10   :  { %433 = dma.done.wait [#allocation7], 640  }
  0x11   :  { %434 = vsyncadd [#allocation7], 4294966656  ;;  %v80_v1 = vld [vmem:[#allocation8 + $0x18] sm:$0xff]  ;;  %v79_v2 = vld [vmem:[#allocation8 + $0x10] sm:$0xff]  ;;  %vm85_vm0 = vcmask 261120   ;;  %v444_v6 = vmov 0   ;;  %v142_v25 = vlaneseq }
  0x12   :  { %101 = vmatpush.msra.mxu0 %v80_v1  ;;  %v78_v3 = vld [vmem:[#allocation8 + $0x8] sm:$0xff]  ;;  %v77_v4 = vld [vmem:[#allocation8] sm:$0xff]  ;;  %297 = vset.pattern.permute.xlu1 %v444_v6  ;;  %v75_v11 = vld [vmem:[#allocation3] sm:$0xff]  ;;  %vm146_vm1 = vcmask 1041409   ;;  %vm149_vm2 = vcmask 58368   ;;  %vm226_vm11 = vcmask 64512  }
  0x13   :  { %v76_v5 = vld [vmem:[%s538_s2] sm:$0x3]  ;;  %298 = vset.pattern.permute.xlu2 %v444_v6  ;;  %299 = vset.pattern.permute.xlu0 %v444_v6  ;;  %v516_v27 = vand.u32 127, %v142_v25  ;;  %s271_s27 = sshll.u32 %s544_s8, 4  ;;  %s446_s28 = smov [#allocation9]   ;;  %vm249_vm12 = vcmask 254976   ;;  %s272_s27 = int_to_ptr.hbm [resolvable:$true] %s271_s27 }
  0x14   :  { %102 = vmatpush.msra.mxu0 %v79_v2  ;;  %v302_v7 = vld [vmem:[#allocation2] ss:$0 sm:$0xff]  ;;  %s258_s29 = sshll.u32 %s446_s28, 4  ;;  %s260_s10 = sshll.u32 %s543_s7, 4  ;;  %s259_s29 = int_to_ptr.vmem [resolvable:$true] %s258_s29  ;;  %s261_s10 = int_to_ptr.hbm [resolvable:$true] %s260_s10 }
  0x15   :  { %135 = vperm.xlu1 %297, %v302_v7   ;;  %v300_v8 = vld [vmem:[%s540_s4] ss:$0 sm:$0xff]  ;;  %s445_s4 = smov [#allocation10]  }
  0x16   :  { %103 = vmatpush.msra.mxu0 %v78_v3  ;;  %v301_v16 = vld [vmem:[%s541_s5] ss:$0 sm:$0xff]  ;;  %s269_s5 = sshll.u32 %s445_s4, 4  ;;  %s270_s5 = int_to_ptr.vmem [resolvable:$true] %s269_s5 }
  0x18   :  { %104 = vmatpush.msra.mxu0 %v77_v4 }
  0x19   :  { %287 = vmatmul.msk.f32.vlgmr.msra.gmra.mxu0 %vm85_vm0, %v76_v5 }
  0x87   :  { %v136_v26 = vpop.permute.xlu1 %135 }
  0x96   :  { %v106_v9 = vpop.f32.mrf.mxu0 }
  0x97   :  { %v107_v10 = vadd.f32 %v300_v8, %v106_v9 }
  0x99   :  { %v110_v12 = vrot.slane %v107_v10, 1  ;;  %v111_v13 = vperm.slane %v107_v10, 0 }
  0x9b   :  { %v112_v14 = vperm.slane %v110_v12, 0  ;;  %v115_v15 = vadd.f32 %v111_v13, %v75_v11 }
  0x9d   :  { %v117_v17 = vmax.f32 %v115_v15, 0.0  ;;  %v116_v18 = vadd.f32 %v112_v14, %v75_v11  ;;  %v214_v11 = vld [vmem:[#allocation6] sm:$0xff] }
  0x9e   :  { %244 = vmatpush.msra.mxu1 %v214_v11 }
  0x9f   :  { %v123_v19 = vmul.f32 %v301_v16, %v117_v17  ;;  %v118_v21 = vmax.f32 %v116_v18, 0.0 }
  0xa1   :  { %v125_v20 = vsel %vm85_vm0, %v123_v19, 0.0  ;;  %v124_v22 = vmul.f32 %v301_v16, %v118_v21 }
  0xa2   :  { %126 = vadd.xlane.f32.xlu0 %v125_v20 }
  0xa3   :  { %v128_v23 = vsel %vm85_vm0, %v124_v22, 0.0 }
  0xaa   :  { %129 = vadd.xlane.f32.xlu0 %v128_v23 }
 0x115   :  { %v127_v24 = vpop.xlane.xlu0 %126 }
 0x116   :  { %v138_v28 = vadd.f32 %v136_v26, %v127_v24 }
 0x118   :  { %v144_v31 = vperm.slane %v138_v28, %v516_v27 }
 0x11d   :  { %v130_v29 = vpop.xlane.xlu0 %129 }
 0x11e   :  { %v139_v30 = vadd.f32 %v136_v26, %v130_v29 }
 0x120   :  { %v145_v32 = vperm.slane %v139_v30, %v516_v27 }
 0x122   :  { %v147_v33 = vsel %vm146_vm1, %v145_v32, %v144_v31 }
 0x123   :  { %v150_v34 = vsel %vm149_vm2, %v147_v33, -inf }
 0x124   :  { %151 = vmax.xlane.f32.xlu1 %v150_v34 }
 0x197   :  { %v152_v35 = vpop.xlane.xlu1 %151 }
 0x198   :  { %v154_v36 = vperm.slane %v152_v35, 0  ;;  %v155_v37 = vperm.slane %v152_v35, 1 }
 0x19a   :  { %v158_v38 = vsub.f32 %v138_v28, %v154_v36  ;;  %v159_v40 = vsub.f32 %v139_v30, %v155_v37 }
 0x19c   :  { %v160_v39 = vmul.f32 1.442695, %v158_v38  ;;  %v162_v41 = vmul.f32 1.442695, %v159_v40 }
 0x19e   :  { %303 = vpow2.f32 %v160_v39 }
 0x19f   :  { %305 = vpow2.f32 %v162_v41 }
 0x1a4   :  { %v304_v42 = vpop.eup %303 }
 0x1a5   :  { %167 = vperm.xlu2 %298, %v304_v42   ;;  %v306_v43 = vpop.eup %305 }
 0x1ad   :  { %170 = vperm.xlu2 %298, %v306_v43  }
 0x1ff   :  { %v168_v44 = vpop.permute.xlu2 %167 }
 0x200   :  { %v172_v46 = vperm.slane %v168_v44, %v516_v27 }
 0x207   :  { %v171_v45 = vpop.permute.xlu2 %170 }
 0x208   :  { %v173_v47 = vperm.slane %v171_v45, %v516_v27 }
 0x20a   :  { %v174_v48 = vsel %vm146_vm1, %v173_v47, %v172_v46 }
 0x20b   :  { %v176_v49 = vsel %vm149_vm2, %v174_v48, 0.0 }
 0x20c   :  { %177 = vadd.xlane.f32.xlu0 %v176_v49 }
 0x27f   :  { %v178_v50 = vpop.xlane.xlu0 %177 }
 0x280   :  { %v180_v51 = vperm.slane %v178_v50, 0  ;;  %v181_v52 = vperm.slane %v178_v50, 1 }
 0x282   :  { %307 = vrcp.f32 %v180_v51  ;;  %v195_v59 = vand.u32 2147483648, %v180_v51  ;;  %v210_v60 = vand.u32 2147483648, %v181_v52  ;;  %v193_v62 = vand.u32 2147483647, %v180_v51 }
 0x283   :  { %309 = vrcp.f32 %v181_v52  ;;  %v208_v0 = vand.u32 2147483647, %v181_v52  ;;  %vm189_vm5 = vweird.f32 %v180_v51  ;;  %vm204_vm6 = vweird.f32 %v181_v52 }
 0x284   :  { %v196_v3 = vor.u32 1.1754944e-38, %v195_v59  ;;  %v211_v4 = vor.u32 1.1754944e-38, %v210_v60  ;;  %vm194_vm9 = vcmp.eq.f32.partialorder %v193_v62, 8.507059e+37 }
 0x285   :  { %vm209_vm10 = vcmp.eq.f32.partialorder %v208_v0, 8.507059e+37 }
 0x288   :  { %v308_v53 = vpop.eup %307 }
 0x289   :  { %v310_v54 = vpop.eup %309  ;;  %v185_v55 = vmul.f32 %v308_v53, %v180_v51  ;;  %vm190_vm3 = vweird.f32 %v308_v53 }
 0x28a   :  { %v200_v56 = vmul.f32 %v310_v54, %v181_v52  ;;  %vm205_vm4 = vweird.f32 %v310_v54  ;;  %vm191_vm7 = vmor %vm189_vm5, %vm190_vm3 }
 0x28b   :  { %v186_v57 = vsub.f32 1.0, %v185_v55  ;;  %vm206_vm8 = vmor %vm204_vm6, %vm205_vm4 }
 0x28c   :  { %v201_v58 = vsub.f32 1.0, %v200_v56 }
 0x28d   :  { %v187_v61 = vmul.f32 %v308_v53, %v186_v57 }
 0x28e   :  { %v202_v63 = vmul.f32 %v310_v54, %v201_v58 }
 0x28f   :  { %v188_v1 = vadd.f32 %v308_v53, %v187_v61 }
 0x290   :  { %v203_v2 = vadd.f32 %v310_v54, %v202_v63 }
 0x291   :  { %v192_v5 = vsel %vm191_vm7, %v308_v53, %v188_v1 }
 0x292   :  { %v207_v6 = vsel %vm206_vm8, %v310_v54, %v203_v2  ;;  %v197_v7 = vsel %vm194_vm9, %v196_v3, %v192_v5 }
 0x293   :  { %v212_v8 = vsel %vm209_vm10, %v211_v4, %v207_v6  ;;  %v198_v9 = vmul.f32 %v304_v42, %v197_v7 }
 0x294   :  { %v213_v10 = vmul.f32 %v306_v43, %v212_v8 }
 0x295   :  { %218 = vperm.xlu2 %298, %v198_v9  }
 0x296   :  { %221 = vperm.xlu0 %299, %v213_v10  }
 0x2ef   :  { %v219_v12 = vpop.permute.xlu2 %218 }
 0x2f0   :  { %v223_v14 = vperm.slane %v219_v12, %v516_v27 }
 0x308   :  { %v222_v13 = vpop.permute.xlu0 %221 }
 0x309   :  { %v224_v15 = vperm.slane %v222_v13, %v516_v27 }
 0x30b   :  { %v225_v16 = vsel %vm146_vm1, %v224_v15, %v223_v14 }
 0x30c   :  { %288 = vmatmul.msk.f32.vlgmr.msra.gmra.mxu1 %vm226_vm11, %v225_v16  ;;  %252 = vst.msk [vmem:[#allocation10] sm:$0x3] %vm149_vm2, %v225_v16 }
 0x30d   :  { %274 = dma.vmem_to_hbm [thread:$0]  %s270_s5, 32, %s272_s27, [#allocation11]  }
 0x389   :  { %v246_v17 = vpop.f32.mrf.mxu1 }
 0x38a   :  { %250 = vst.msk [vmem:[#allocation9] sm:$0x3] %vm249_vm12, %v246_v17 }
 0x38b   :  { %263 = dma.vmem_to_hbm [thread:$0]  %s259_s29, 32, %s261_s10, [#allocation5]  }
 0x38c   :  { %435 = dma.done.wait [#allocation5], 32  }
 0x38d   :  { %436 = vsyncadd [#allocation5], 4294967264 }
 0x38e   :  { %437 = dma.done.wait [#allocation11], 32  }
 0x38f   :  { %438 = vsyncadd [#allocation11], 4294967264 }
 0x390   :  { %283 = vsyncpa [#allocation4], 1 }
 0x391   :  { %284 = vsyncpa [#allocation7], 1 }
 0x392   :  { %285 = vsyncpa [#allocation5], 1 }
 0x393   :  { %286 = vsyncpa [#allocation11], 1 }

</bundles_post_ra>
